<compile_context>
chip_gen: v6e
topology: v6e:2x2x1
jax: 0.10.0
libtpu: 0.0.40
codegen_flags: <defaults>
</compile_context>

<pallas_src>
import functools

import jax
import jax.numpy as jnp
from jax.experimental import pallas as pl
from jax.experimental.pallas import tpu as pltpu

CLS_PAD = 128   # lane-dense class axis width
TB = 8          # batch tile (f32 sublane)


# ----------------------------------------------------------------------------
# Fused post-pool kernel
# ----------------------------------------------------------------------------
def _fused_forward_kernel(num_classes,
                          lang_ref, vis_ref,
                          wl_ref, bl_ref, wv_ref, bv_ref,
                          wf_top_ref, wf_bot_ref, bf_ref,
                          wc_ref, bc_ref,
                          out_ref):
    # --- language / visual projection heads (the stubs' final Linear) --------
    lang_in = lang_ref[...].astype(jnp.bfloat16)
    vis_in = vis_ref[...].astype(jnp.bfloat16)
    lang_logits = jnp.dot(lang_in, wl_ref[...],
                          preferred_element_type=jnp.float32) + bl_ref[...]
    vis_logits = jnp.dot(vis_in, wv_ref[...],
                         preferred_element_type=jnp.float32) + bv_ref[...]

    # --- fusion Linear on the virtual concat (split-weight accumulation) -----
    fused = (jnp.dot(lang_logits.astype(jnp.bfloat16), wf_top_ref[...],
                     preferred_element_type=jnp.float32)
             + jnp.dot(vis_logits.astype(jnp.bfloat16), wf_bot_ref[...],
                       preferred_element_type=jnp.float32)
             + bf_ref[...])

    # --- dropout: eval-mode identity ------------------------------------------
    # TODO(synk): training-mode dropout would use pltpu.prng_seed / prng_random_bits.

    # --- classifier Linear into a lane-dense, 128-padded class axis ----------
    logits = jnp.dot(fused.astype(jnp.bfloat16), wc_ref[...],
                     preferred_element_type=jnp.float32) + bc_ref[...]

    # --- masked, numerically stable softmax over the real classes ------------
    # (torch.nn.Softmax() on 2-D input -> dim=1; ReLU is defined but unused.)
    valid = jax.lax.broadcasted_iota(jnp.int32, logits.shape, 1) < num_classes
    logits = jnp.where(valid, logits, -jnp.inf)
    m = jnp.max(logits, axis=-1, keepdims=True)
    e = jnp.exp(logits - m)                      # padded lanes -> exp(-inf) == 0
    denom = jnp.sum(e, axis=-1, keepdims=True)
    out_ref[...] = e * pl.reciprocal(denom, approx=True)


def fused_post_pool_forward(lang_pooled, vis_pooled, params):
    """lang_pooled (B,E), vis_pooled (B,Cin) -> softmax probs (B, num_classes)."""
    f32, bf16 = jnp.float32, jnp.bfloat16

    B, E = lang_pooled.shape
    CI = vis_pooled.shape[1]
    B_pad = pl.cdiv(B, TB) * TB

    lang_pooled = jnp.pad(lang_pooled.astype(f32), ((0, B_pad - B), (0, 0)))
    vis_pooled = jnp.pad(vis_pooled.astype(f32), ((0, B_pad - B), (0, 0)))

    # matmul operands in bf16; biases stay f32 (added post-accumulation)
    w_lang = params["w_lang"].astype(bf16)
    w_vis = params["w_vis"].astype(bf16)
    b_lang = params["b_lang"].reshape(1, -1).astype(f32)
    b_vis = params["b_vis"].reshape(1, -1).astype(f32)

    L = w_lang.shape[1]
    V = w_vis.shape[1]
    w_fusion = params["w_fusion"].astype(bf16)
    wf_top, wf_bot = w_fusion[:L], w_fusion[L:]
    b_fusion = params["b_fusion"].reshape(1, -1).astype(f32)

    w_cls = params["w_cls"].astype(bf16)
    b_cls = params["b_cls"].reshape(1, -1).astype(f32)
    F_dim, C = w_cls.shape
    w_cls_pad = jnp.pad(w_cls, ((0, 0), (0, CLS_PAD - C)))
    b_cls_pad = jnp.pad(b_cls, ((0, 0), (0, CLS_PAD - C)))

    grid = (B_pad // TB,)

    def act_spec(d):
        return pl.BlockSpec((TB, d), lambda i: (i, 0))

    def weight_spec(arr):
        return pl.BlockSpec(arr.shape, lambda i: (0, 0))   # VMEM-resident

    flops = 2 * B_pad * (E * L + CI * V + L * F_dim + V * F_dim + F_dim * CLS_PAD)
    bytes_accessed = int(
        (lang_pooled.size + vis_pooled.size) * 4
        + (w_lang.size + w_vis.size + wf_top.size + wf_bot.size + w_cls_pad.size) * 2
        + (b_lang.size + b_vis.size + b_fusion.size + b_cls_pad.size) * 4
        + B_pad * CLS_PAD * 4)
    cost = pl.CostEstimate(flops=int(flops),
                           transcendentals=int(B_pad * (CLS_PAD + 1)),
                           bytes_accessed=bytes_accessed)

    out_pad = pl.pallas_call(
        functools.partial(_fused_forward_kernel, C),
        out_shape=jax.ShapeDtypeStruct((B_pad, CLS_PAD), jnp.float32),
        grid_spec=pltpu.PrefetchScalarGridSpec(
            num_scalar_prefetch=0,
            grid=grid,
            in_specs=[
                act_spec(E), act_spec(CI),
                weight_spec(w_lang), weight_spec(b_lang),
                weight_spec(w_vis), weight_spec(b_vis),
                weight_spec(wf_top), weight_spec(wf_bot), weight_spec(b_fusion),
                weight_spec(w_cls_pad), weight_spec(b_cls_pad),
            ],
            out_specs=pl.BlockSpec((TB, CLS_PAD), lambda i: (i, 0)),
        ),
        compiler_params=pltpu.CompilerParams(
            dimension_semantics=("parallel",)),
        cost_estimate=cost,
    )(lang_pooled, vis_pooled,
      w_lang, b_lang, w_vis, b_vis,
      wf_top, wf_bot, b_fusion,
      w_cls_pad, b_cls_pad)

    return out_pad[:B, :C]


# ----------------------------------------------------------------------------
# Synthetic sub-module backbones (plain JAX glue; the real ones are arbitrary
# external modules whose `.logits` we emulate with pooling + the in-kernel
# projection above).
# ----------------------------------------------------------------------------
def language_pool_stub(input_ids, attention_mask, emb_table):
    emb = emb_table[input_ids]                                  # (B, S, E)
    mask = attention_mask.astype(jnp.float32)[..., None]        # (B, S, 1)
    return jnp.sum(emb * mask, axis=1) / jnp.maximum(jnp.sum(mask, axis=1), 1.0)


def visual_pool_stub(image_features):
    return jnp.mean(image_features, axis=(2, 3))                # NCHW -> (B, C_in)


# ----------------------------------------------------------------------------
# Full forward
# ----------------------------------------------------------------------------
def multimodal_forward(input_ids, attention_mask, image_features, params):
    lang_pooled = language_pool_stub(input_ids, attention_mask, params["emb_table"])
    vis_pooled = visual_pool_stub(image_features)
    return fused_post_pool_forward(lang_pooled, vis_pooled, params)


# ----------------------------------------------------------------------------
# Plain-JAX reference (f32) for sanity checking
# ----------------------------------------------------------------------------
def reference_forward(input_ids, attention_mask, image_features, params):
    lang_pooled = language_pool_stub(input_ids, attention_mask, params["emb_table"])
    vis_pooled = visual_pool_stub(image_features)
    lang_logits = lang_pooled @ params["w_lang"] + params["b_lang"]
    vis_logits = vis_pooled @ params["w_vis"] + params["b_vis"]
    combined = jnp.concatenate([lang_logits, vis_logits], axis=1)
    fused = combined @ params["w_fusion"] + params["b_fusion"]
    logits = fused @ params["w_cls"] + params["b_cls"]
    return jax.nn.softmax(logits, axis=-1)


if __name__ == "__main__":
    # Small, deterministic configuration
    batch = 2
    seq = 8
    vocab = 100
    emb_dim = 16
    img_c, img_h, img_w = 4, 16, 16
    language_model_dim = 16
    visual_model_dim = 16
    fusion_dim = 32
    num_classes = 3

    key = jax.random.PRNGKey(0)
    keys = jax.random.split(key, 10)

    params = {
        # submodule stubs
        "emb_table": jax.random.normal(keys[0], (vocab, emb_dim), jnp.float32) * 0.02,
        "w_lang":    jax.random.normal(keys[1], (emb_dim, language_model_dim), jnp.float32) * 0.1,
        "b_lang":    jnp.zeros((language_model_dim,), jnp.float32),
        "w_vis":     jax.random.normal(keys[2], (img_c, visual_model_dim), jnp.float32) * 0.1,
        "b_vis":     jnp.zeros((visual_model_dim,), jnp.float32),
        # fusion + classifier
        "w_fusion":  jax.random.normal(keys[3], (language_model_dim + visual_model_dim, fusion_dim), jnp.float32) * 0.1,
        "b_fusion":  jax.random.normal(keys[4], (1, fusion_dim), jnp.float32) * 0.01,
        "w_cls":     jax.random.normal(keys[5], (fusion_dim, num_classes), jnp.float32) * 0.1,
        "b_cls":     jax.random.normal(keys[6], (1, num_classes), jnp.float32) * 0.01,
    }

    input_ids = jax.random.randint(keys[7], (batch, seq), 0, vocab, dtype=jnp.int32)
    attention_mask = jnp.ones((batch, seq), jnp.int32)
    image_features = jax.random.normal(keys[8], (batch, img_c, img_h, img_w), jnp.float32)

    out = multimodal_forward(input_ids, attention_mask, image_features, params)
    out = jax.block_until_ready(out)

    assert out.shape == (batch, num_classes)
    assert bool(jnp.all(jnp.isfinite(out)))
    # softmax rows sum to ~1 (approx reciprocal + bf16 matmuls -> loose tol)
    assert bool(jnp.allclose(jnp.sum(out, axis=-1), 1.0, atol=2e-3))
    # matches the f32 reference to bf16/approx tolerance
    ref = reference_forward(input_ids, attention_mask, image_features, params)
    assert bool(jnp.allclose(out, ref, atol=5e-2))

    print("KERNEL_OK")
</pallas_src>

<mosaic_0001>
module attributes {stable_mosaic.version = 11 : i64} {
  func.func @_fused_forward_kernel(%arg0: i32, %arg1: memref<8x16xf32, #tpu.memory_space<vmem>>, %arg2: memref<8x4xf32, #tpu.memory_space<vmem>>, %arg3: memref<16x16xbf16, #tpu.memory_space<vmem>>, %arg4: memref<1x16xf32, #tpu.memory_space<vmem>>, %arg5: memref<4x16xbf16, #tpu.memory_space<vmem>>, %arg6: memref<1x16xf32, #tpu.memory_space<vmem>>, %arg7: memref<16x32xbf16, #tpu.memory_space<vmem>>, %arg8: memref<16x32xbf16, #tpu.memory_space<vmem>>, %arg9: memref<1x32xf32, #tpu.memory_space<vmem>>, %arg10: memref<32x128xbf16, #tpu.memory_space<vmem>>, %arg11: memref<1x128xf32, #tpu.memory_space<vmem>>, %arg12: memref<8x128xf32, #tpu.memory_space<vmem>>) attributes {dimension_semantics = [#tpu.dimension_semantics<parallel>], iteration_bounds = array<i64: 1>, scalar_prefetch = 0 : i64, scratch_operands = 0 : i64, tpu.core_type = #tpu.core_type<tc>, window_params = [{transform_indices = @transform_0, window_bounds = array<i64: 8, 16>}, {transform_indices = @transform_1, window_bounds = array<i64: 8, 4>}, {pipeline_mode = #tpu.pipeline_mode<synchronous>, transform_indices = @transform_2, window_bounds = array<i64: 16, 16>}, {pipeline_mode = #tpu.pipeline_mode<synchronous>, transform_indices = @transform_3, window_bounds = array<i64: 1, 16>}, {pipeline_mode = #tpu.pipeline_mode<synchronous>, transform_indices = @transform_4, window_bounds = array<i64: 4, 16>}, {pipeline_mode = #tpu.pipeline_mode<synchronous>, transform_indices = @transform_5, window_bounds = array<i64: 1, 16>}, {pipeline_mode = #tpu.pipeline_mode<synchronous>, transform_indices = @transform_6, window_bounds = array<i64: 16, 32>}, {pipeline_mode = #tpu.pipeline_mode<synchronous>, transform_indices = @transform_7, window_bounds = array<i64: 16, 32>}, {pipeline_mode = #tpu.pipeline_mode<synchronous>, transform_indices = @transform_8, window_bounds = array<i64: 1, 32>}, {pipeline_mode = #tpu.pipeline_mode<synchronous>, transform_indices = @transform_9, window_bounds = array<i64: 32, 128>}, {pipeline_mode = #tpu.pipeline_mode<synchronous>, transform_indices = @transform_10, window_bounds = array<i64: 1, 128>}, {transform_indices = @transform_11, window_bounds = array<i64: 8, 128>}]} {
    %c0 = arith.constant 0 : index
    %c0_0 = arith.constant 0 : index
    %0 = vector.load %arg1[%c0, %c0_0] : memref<8x16xf32, #tpu.memory_space<vmem>>, vector<8x16xf32>
    %1 = arith.truncf %0 : vector<8x16xf32> to vector<8x16xbf16>
    %c0_1 = arith.constant 0 : index
    %c0_2 = arith.constant 0 : index
    %2 = vector.load %arg2[%c0_1, %c0_2] : memref<8x4xf32, #tpu.memory_space<vmem>>, vector<8x4xf32>
    %3 = arith.truncf %2 : vector<8x4xf32> to vector<8x4xbf16>
    %c0_3 = arith.constant 0 : index
    %c0_4 = arith.constant 0 : index
    %4 = vector.load %arg3[%c0_3, %c0_4] : memref<16x16xbf16, #tpu.memory_space<vmem>>, vector<16x16xbf16>
    %cst = arith.constant dense<0.000000e+00> : vector<8x16xf32>
    %5 = tpu.matmul %1, %4, %cst {dimension_numbers = #tpu.dot_dimension_numbers<[1], [0], [0], [1], [0, 0, 1, 1], [], []>} : vector<8x16xbf16>, vector<16x16xbf16>, vector<8x16xf32> -> vector<8x16xf32>
    %c0_5 = arith.constant 0 : index
    %c0_6 = arith.constant 0 : index
    %6 = vector.load %arg4[%c0_5, %c0_6] : memref<1x16xf32, #tpu.memory_space<vmem>>, vector<1x16xf32>
    %7 = vector.broadcast %6 : vector<1x16xf32> to vector<8x16xf32>
    %8 = arith.addf %5, %7 : vector<8x16xf32>
    %c0_7 = arith.constant 0 : index
    %c0_8 = arith.constant 0 : index
    %9 = vector.load %arg5[%c0_7, %c0_8] : memref<4x16xbf16, #tpu.memory_space<vmem>>, vector<4x16xbf16>
    %cst_9 = arith.constant dense<0.000000e+00> : vector<8x16xf32>
    %10 = tpu.matmul %3, %9, %cst_9 {dimension_numbers = #tpu.dot_dimension_numbers<[1], [0], [0], [1], [0, 0, 1, 1], [], []>} : vector<8x4xbf16>, vector<4x16xbf16>, vector<8x16xf32> -> vector<8x16xf32>
    %c0_10 = arith.constant 0 : index
    %c0_11 = arith.constant 0 : index
    %11 = vector.load %arg6[%c0_10, %c0_11] : memref<1x16xf32, #tpu.memory_space<vmem>>, vector<1x16xf32>
    %12 = vector.broadcast %11 : vector<1x16xf32> to vector<8x16xf32>
    %13 = arith.addf %10, %12 : vector<8x16xf32>
    %14 = arith.truncf %8 : vector<8x16xf32> to vector<8x16xbf16>
    %c0_12 = arith.constant 0 : index
    %c0_13 = arith.constant 0 : index
    %15 = vector.load %arg7[%c0_12, %c0_13] : memref<16x32xbf16, #tpu.memory_space<vmem>>, vector<16x32xbf16>
    %cst_14 = arith.constant dense<0.000000e+00> : vector<8x32xf32>
    %16 = tpu.matmul %14, %15, %cst_14 {dimension_numbers = #tpu.dot_dimension_numbers<[1], [0], [0], [1], [0, 0, 1, 1], [], []>} : vector<8x16xbf16>, vector<16x32xbf16>, vector<8x32xf32> -> vector<8x32xf32>
    %17 = arith.truncf %13 : vector<8x16xf32> to vector<8x16xbf16>
    %c0_15 = arith.constant 0 : index
    %c0_16 = arith.constant 0 : index
    %18 = vector.load %arg8[%c0_15, %c0_16] : memref<16x32xbf16, #tpu.memory_space<vmem>>, vector<16x32xbf16>
    %cst_17 = arith.constant dense<0.000000e+00> : vector<8x32xf32>
    %19 = tpu.matmul %17, %18, %cst_17 {dimension_numbers = #tpu.dot_dimension_numbers<[1], [0], [0], [1], [0, 0, 1, 1], [], []>} : vector<8x16xbf16>, vector<16x32xbf16>, vector<8x32xf32> -> vector<8x32xf32>
    %20 = arith.addf %16, %19 : vector<8x32xf32>
    %c0_18 = arith.constant 0 : index
    %c0_19 = arith.constant 0 : index
    %21 = vector.load %arg9[%c0_18, %c0_19] : memref<1x32xf32, #tpu.memory_space<vmem>>, vector<1x32xf32>
    %22 = vector.broadcast %21 : vector<1x32xf32> to vector<8x32xf32>
    %23 = arith.addf %20, %22 : vector<8x32xf32>
    %24 = arith.truncf %23 : vector<8x32xf32> to vector<8x32xbf16>
    %c0_20 = arith.constant 0 : index
    %c0_21 = arith.constant 0 : index
    %25 = vector.load %arg10[%c0_20, %c0_21] : memref<32x128xbf16, #tpu.memory_space<vmem>>, vector<32x128xbf16>
    %cst_22 = arith.constant dense<0.000000e+00> : vector<8x128xf32>
    %26 = tpu.matmul %24, %25, %cst_22 {dimension_numbers = #tpu.dot_dimension_numbers<[1], [0], [0], [1], [0, 0, 1, 1], [], []>} : vector<8x32xbf16>, vector<32x128xbf16>, vector<8x128xf32> -> vector<8x128xf32>
    %c0_23 = arith.constant 0 : index
    %c0_24 = arith.constant 0 : index
    %27 = vector.load %arg11[%c0_23, %c0_24] : memref<1x128xf32, #tpu.memory_space<vmem>>, vector<1x128xf32>
    %28 = vector.broadcast %27 : vector<1x128xf32> to vector<8x128xf32>
    %29 = arith.addf %26, %28 : vector<8x128xf32>
    %30 = tpu.iota {dimensions = array<i32: 1>} : vector<8x128xi32>
    %c3_i32 = arith.constant 3 : i32
    %31 = vector.broadcast %c3_i32 : i32 to vector<8x128xi32>
    %32 = arith.cmpi slt, %30, %31 : vector<8x128xi32>
    %cst_25 = arith.constant 0xFF800000 : f32
    %33 = vector.broadcast %cst_25 : f32 to vector<8x128xf32>
    %34 = arith.select %32, %29, %33 : vector<8x128xi1>, vector<8x128xf32>
    %cst_26 = arith.constant dense<0xFF800000> : vector<8xf32>
    %35 = vector.multi_reduction <maximumf>, %34, %cst_26 [1] : vector<8x128xf32> to vector<8xf32>
    %36 = vector.shape_cast %35 : vector<8xf32> to vector<8x1xf32>
    %37 = vector.broadcast %36 : vector<8x1xf32> to vector<8x128xf32>
    %38 = arith.subf %34, %37 : vector<8x128xf32>
    %39 = math.exp %38 : vector<8x128xf32>
    %cst_27 = arith.constant dense<0.000000e+00> : vector<8xf32>
    %40 = vector.multi_reduction <add>, %39, %cst_27 [1] : vector<8x128xf32> to vector<8xf32>
    %41 = vector.shape_cast %40 : vector<8xf32> to vector<8x1xf32>
    %42 = tpu.reciprocal %41 {approx = true} : vector<8x1xf32> -> vector<8x1xf32>
    %43 = vector.broadcast %42 : vector<8x1xf32> to vector<8x128xf32>
    %44 = arith.mulf %39, %43 : vector<8x128xf32>
    %c0_28 = arith.constant 0 : index
    %c0_29 = arith.constant 0 : index
    %45 = vector.load %arg12[%c0_28, %c0_29] : memref<8x128xf32, #tpu.memory_space<vmem>>, vector<8x128xf32>
    tpu.vector_store %arg12[%c0_28, %c0_29], %44 {strides = array<i32>} : memref<8x128xf32, #tpu.memory_space<vmem>>, vector<8x128xf32>,
    return
  }
  func.func @transform_0(%arg0: i32) -> (i32, i32) {
    %c0_i32 = arith.constant 0 : i32
    %c0_i32_0 = arith.constant 0 : i32
    return %arg0, %c0_i32 : i32, i32
  }
  func.func @transform_1(%arg0: i32) -> (i32, i32) {
    %c0_i32 = arith.constant 0 : i32
    %c0_i32_0 = arith.constant 0 : i32
    return %arg0, %c0_i32 : i32, i32
  }
  func.func @transform_2(%arg0: i32) -> (i32, i32) {
    %c0_i32 = arith.constant 0 : i32
    %c0_i32_0 = arith.constant 0 : i32
    %c0_i32_1 = arith.constant 0 : i32
    return %c0_i32, %c0_i32_0 : i32, i32
  }
  func.func @transform_3(%arg0: i32) -> (i32, i32) {
    %c0_i32 = arith.constant 0 : i32
    %c0_i32_0 = arith.constant 0 : i32
    %c0_i32_1 = arith.constant 0 : i32
    return %c0_i32, %c0_i32_0 : i32, i32
  }
  func.func @transform_4(%arg0: i32) -> (i32, i32) {
    %c0_i32 = arith.constant 0 : i32
    %c0_i32_0 = arith.constant 0 : i32
    %c0_i32_1 = arith.constant 0 : i32
    return %c0_i32, %c0_i32_0 : i32, i32
  }
  func.func @transform_5(%arg0: i32) -> (i32, i32) {
    %c0_i32 = arith.constant 0 : i32
    %c0_i32_0 = arith.constant 0 : i32
    %c0_i32_1 = arith.constant 0 : i32
    return %c0_i32, %c0_i32_0 : i32, i32
  }
  func.func @transform_6(%arg0: i32) -> (i32, i32) {
    %c0_i32 = arith.constant 0 : i32
    %c0_i32_0 = arith.constant 0 : i32
    %c0_i32_1 = arith.constant 0 : i32
    return %c0_i32, %c0_i32_0 : i32, i32
  }
  func.func @transform_7(%arg0: i32) -> (i32, i32) {
    %c0_i32 = arith.constant 0 : i32
    %c0_i32_0 = arith.constant 0 : i32
    %c0_i32_1 = arith.constant 0 : i32
    return %c0_i32, %c0_i32_0 : i32, i32
  }
  func.func @transform_8(%arg0: i32) -> (i32, i32) {
    %c0_i32 = arith.constant 0 : i32
    %c0_i32_0 = arith.constant 0 : i32
    %c0_i32_1 = arith.constant 0 : i32
    return %c0_i32, %c0_i32_0 : i32, i32
  }
  func.func @transform_9(%arg0: i32) -> (i32, i32) {
    %c0_i32 = arith.constant 0 : i32
    %c0_i32_0 = arith.constant 0 : i32
    %c0_i32_1 = arith.constant 0 : i32
    return %c0_i32, %c0_i32_0 : i32, i32
  }
  func.func @transform_10(%arg0: i32) -> (i32, i32) {
    %c0_i32 = arith.constant 0 : i32
    %c0_i32_0 = arith.constant 0 : i32
    %c0_i32_1 = arith.constant 0 : i32
    return %c0_i32, %c0_i32_0 : i32, i32
  }
  func.func @transform_11(%arg0: i32) -> (i32, i32) {
    %c0_i32 = arith.constant 0 : i32
    %c0_i32_0 = arith.constant 0 : i32
    return %arg0, %c0_i32 : i32, i32
  }
}

</mosaic_0001>

<bundles_post_ra>
// kernel: tpu_custom_call.1
= control target key start
LH: loop header
LB: loop body
LE: loop exit
PB: predicated region body
PF: predicated region fallthrough
CT: control target
= control target key end

     0   :  { %16 = vsyncpa [#allocation3], 0  ;;  %s722_s0 = inlined_call_operand.vmem [shape: f32[8,16], index: 0, kind: input, shape index: {}]   ;;  %s723_s1 = inlined_call_operand.vmem [shape: f32[8,4], index: 1, kind: input, shape index: {}]   ;;  %s724_s2 = inlined_call_operand.hbm [shape: bf16[16,16], index: 2, kind: input, shape index: {}]   ;;  %s725_s3 = inlined_call_operand.vmem [shape: f32[1,16], index: 3, kind: input, shape index: {}]   ;;  %s726_s4 = inlined_call_operand.vmem [shape: bf16[4,16], index: 4, kind: input, shape index: {}]   ;;  %s727_s5 = inlined_call_operand.vmem [shape: f32[1,16], index: 5, kind: input, shape index: {}]   ;;  %s728_s6 = inlined_call_operand.hbm [shape: bf16[16,32], index: 6, kind: input, shape index: {}]   ;;  %s729_s7 = inlined_call_operand.hbm [shape: bf16[16,32], index: 7, kind: input, shape index: {}]   ;;  %s730_s8 = inlined_call_operand.hbm [shape: f32[1,32], index: 8, kind: input, shape index: {}]   ;;  %s731_s9 = inlined_call_operand.vmem [shape: bf16[32,128], index: 9, kind: input, shape index: {}]   ;;  %s732_s10 = inlined_call_operand.vmem [shape: f32[1,128], index: 10, kind: input, shape index: {}]   ;;  %s733_s11 = inlined_call_operand.hbm [shape: f32[8,128], index: 11, kind: output, shape index: {}]  }
   0x1   :  { %17 = vsyncpa [#allocation6], 0 }
   0x2   :  { %18 = vsyncpa [#allocation9], 0 }
   0x3   :  { %19 = vsyncpa [#allocation4], 0  ;;  %s606_s17 = smov [#allocation5]   ;;  %s607_s19 = smov [#allocation2]  }
   0x4   :  { %s47_s18 = sshll.u32 %s606_s17, 4  ;;  %s29_s20 = sshll.u32 %s607_s19, 4  ;;  %s48_s18 = int_to_ptr.vmem [resolvable:$true] %s47_s18  ;;  %s30_s20 = int_to_ptr.vmem [resolvable:$true] %s29_s20 }
   0x5   :  { %s506_s21 = scalar_lea.vmem %s48_s18, 128  ;;  %p511_p1 = scmp.lt.s32.totalorder %s48_s18, %s48_s18 }
   0x6   :  { %p507_p0 = scmp.ne.s32.totalorder %s48_s18, %s506_s21  ;;  %p512_p2 = scmp.lt.s32.totalorder %s506_s21, %s506_s21 }
   0x8   :  { %p513_p3 = por %p512_p2, %p511_p1 }
   0xa   :  { %p514_p4 = pnand %p513_p3, %p507_p0 }
   0xc   :  { %517 = shalt.err (!%p514_p4)
}
   0xd   :  { %s608_s22 = smov 64   ;;  %s609_s23 = smov 4  }
   0xe   :  { %53 = dma.hbm_to_vmem [thread:$0]  %s728_s6, 128, %s48_s18, [#allocation6], %s608_s22, %s608_s22, %s609_s23  }
   0xf   :  { %s526_s26 = scalar_lea.vmem %s30_s20, 128  ;;  %p531_p6 = scmp.lt.s32.totalorder %s30_s20, %s30_s20 }
  0x10   :  { %p527_p5 = scmp.ne.s32.totalorder %s30_s20, %s526_s26  ;;  %p532_p7 = scmp.lt.s32.totalorder %s526_s26, %s526_s26 }
  0x12   :  { %p533_p8 = por %p532_p7, %p531_p6 }
  0x14   :  { %p534_p9 = pnand %p533_p8, %p527_p5 }
  0x16   :  { %537 = shalt.err (!%p534_p9)
}
  0x17   :  { %35 = dma.hbm_to_vmem [thread:$0]  %s724_s2, 128, %s30_s20, [#allocation3], %s608_s22, %s608_s22, %s609_s23  }
  0x18   :  { %s610_s29 = smov [#allocation7]   ;;  %s611_s12 = smov [#allocation8]  }
  0x19   :  { %s59_s30 = sshll.u32 %s610_s29, 4  ;;  %s72_s13 = sshll.u32 %s611_s12, 4  ;;  %s60_s30 = int_to_ptr.vmem [resolvable:$true] %s59_s30  ;;  %s73_s13 = int_to_ptr.vmem [resolvable:$true] %s72_s13 }
  0x1a   :  { %s546_s14 = scalar_lea.vmem %s60_s30, 128  ;;  %p551_p11 = scmp.lt.s32.totalorder %s60_s30, %s60_s30 }
  0x1b   :  { %p547_p10 = scmp.ne.s32.totalorder %s60_s30, %s546_s14  ;;  %p552_p12 = scmp.lt.s32.totalorder %s546_s14, %s546_s14 }
  0x1d   :  { %p553_p13 = por %p552_p12, %p551_p11 }
  0x1f   :  { %p554_p0 = pnand %p553_p13, %p547_p10 }
  0x21   :  { %557 = shalt.err (!%p554_p0)
}
  0x22   :  { %65 = dma.hbm_to_vmem [thread:$0]  %s729_s7, 128, %s60_s30, [#allocation6], %s608_s22, %s608_s22, %s609_s23  }
  0x23   :  { %s566_s16 = scalar_lea.vmem %s73_s13, 16  ;;  %s570_s2 = scalar_lea.vmem %s73_s13, 32 }
  0x24   :  { %p567_p1 = scmp.ne.s32.totalorder %s73_s13, %s566_s16  ;;  %p571_p2 = scmp.lt.s32.totalorder %s73_s13, %s73_s13 }
  0x25   :  { %p572_p3 = scmp.lt.s32.totalorder %s570_s2, %s566_s16 }
  0x27   :  { %p573_p4 = por %p572_p3, %p571_p2 }
  0x29   :  { %p574_p5 = pnand %p573_p4, %p567_p1 }
  0x2b   :  { %577 = shalt.err (!%p574_p5)
}
  0x2c   :  { %75 = dma.hbm_to_vmem [thread:$0]  %s730_s8, 16, %s73_s13, [#allocation9]  }
  0x2d   :  { %598 = dma.done.wait [#allocation3], 128  }
  0x2e   :  { %599 = vsyncadd [#allocation3], 4294967168 }
  0x2f   :  { %600 = dma.done.wait [#allocation6], 256  }
  0x30   :  { %601 = vsyncadd [#allocation6], 4294967040 }
  0x31   :  { %602 = dma.done.wait [#allocation9], 16  }
  0x32   :  { %603 = vsyncadd [#allocation9], 4294967280  ;;  %v612_v0 = vmov 0.0   ;;  %vm613_vm0 = vmmov 0   ;;  %vm168_vm1 = vcmask 1041408   ;;  %v489_v3 = vld [vmem:[#allocation2] sm:$0xff]   ;;  %v392_v38 = vlaneseq }
  0x33   :  { %454 = vmatprep.subr.bf16.mxu1 %v612_v0  ;;  %448 = vmatprep.subr.bf16.mxu0 %v612_v0  ;;  %v156_v1 = vld [vmem:[%s726_s4] sm:$0x3]  ;;  %vm164_vm2 = vcmask 31744   ;;  %v490_v8 = vld [vmem:[#allocation7] sm:$0xff]   ;;  %vm112_vm3 = vcmask 130048   ;;  %v491_v9 = vld [vmem:[#allocation5] sm:$0xff]  }
  0x34   :  { %456 = vmatprep.mubr.msk.bf16.mxu1 %vm613_vm0, %v612_v0  ;;  %450 = vmatprep.mubr.msk.bf16.mxu0 %vm613_vm0, %v612_v0  ;;  %v170_v2 = vsel %vm168_vm1, %v156_v1, 0  ;;  %v95_v4 = vld [vmem:[%s723_s1] sm:$0xff]  ;;  %v492_v24 = vld [vmem:[%s731_s9 + $0x8] sm:$0xff]   ;;  %v432_v28 = vld [vmem:[#allocation8] ss:$0 sm:$0xff]  ;;  %vm348_vm4 = vcmask 261120  }
  0x35   :  { %v93_v5 = vld [vmem:[%s722_s0] sm:$0xff]  ;;  %455 = vmatpush3.bf16.msra.mxu1 %v170_v2  ;;  %v96_v6 = vpack.c.bf16 %v95_v4, %v95_v4  ;;  %449 = vmatpush3.bf16.msra.mxu0 %v489_v3  ;;  %v393_v39 = vand.u32 127, %v392_v38 }
  0x36   :  { %v94_v7 = vpack.c.bf16 %v93_v5, %v93_v5  ;;  %466 = vmatprep.subr.bf16.mxu1 %v612_v0  ;;  %460 = vmatprep.subr.bf16.mxu0 %v612_v0  ;;  %v426_v10 = vld [vmem:[%s727_s5] ss:$0 sm:$0xff] }
  0x37   :  { %v423_v11 = vld [vmem:[%s725_s3] ss:$0 sm:$0xff]  ;;  %vm394_vm5 = vcmp.lt.s32.totalorder %v393_v39, 3 }
  0x38   :  { %457 = vmatmul.mubr.msk.bf16.vlgmr.msra.gmra.mxu1 %vm164_vm2, %v96_v6  ;;  %451 = vmatmul.mubr.msk.bf16.vlgmr.msra.gmra.mxu0 %vm112_vm3, %v94_v7  ;;  %v493_v25 = vld [vmem:[%s731_s9] sm:$0xff]   ;;  %s614_s9 = smov [#allocation10]  }
  0x39   :  { %467 = vmatpush3.bf16.msra.mxu1 %v491_v9  ;;  %461 = vmatpush3.bf16.msra.mxu0 %v490_v8  ;;  %v433_v40 = vld [vmem:[%s732_s10] ss:$0 sm:$0xff]  ;;  %s412_s28 = sshll.u32 %s614_s9, 4  ;;  %s413_s28 = int_to_ptr.vmem [resolvable:$true] %s412_s28 }
  0x3a   :  { %462 = vmatprep.mubr.msk.bf16.mxu0 %vm613_vm0, %v612_v0  ;;  %468 = vmatprep.mubr.msk.bf16.mxu1 %vm613_vm0, %v612_v0  ;;  %s578_s10 = scalar_lea.vmem %s413_s28, 128  ;;  %p583_p7 = scmp.lt.s32.totalorder %s413_s28, %s413_s28 }
  0x3b   :  { %472 = vmatprep.subr.bf16.mxu0 %v612_v0  ;;  %p579_p6 = scmp.ne.s32.totalorder %s413_s28, %s578_s10  ;;  %p584_p8 = scmp.lt.s32.totalorder %s578_s10, %s578_s10 }
  0x3d   :  { %p585_p9 = por %p584_p8, %p583_p7 }
  0x3f   :  { %p586_p10 = pnand %p585_p9, %p579_p6 }
  0xf8   :  { %v206_v12 = vpop.f32.mrf.mxu1  ;;  %v150_v14 = vpop.f32.mrf.mxu0 }
  0xf9   :  { %v207_v13 = vadd.f32 %v426_v10, %v206_v12  ;;  %v151_v15 = vadd.f32 %v423_v11, %v150_v14 }
  0xfa   :  { %v458_v16 = vpop.f32.mrf.mxu1  ;;  %v452_v18 = vpop.f32.mrf.mxu0 }
  0xfb   :  { %v215_v17 = vpack.c.bf16 %v207_v13, %v207_v13  ;;  %v212_v19 = vpack.c.bf16 %v151_v15, %v151_v15 }
  0xfc   :  { %v209_v20 = vpop.f32.mrf.mxu1  ;;  %v153_v21 = vpop.f32.mrf.mxu0 }
  0xfd   :  { %463 = vmatmul.mubr.msk.bf16.vlgmr.msra.gmra.mxu0 %vm112_vm3, %v215_v17  ;;  %469 = vmatmul.mubr.msk.bf16.vlgmr.msra.gmra.mxu1 %vm112_vm3, %v212_v19 }
  0xfe   :  { %v459_v22 = vpop.f32.mrf.mxu1  ;;  %476 = vmatprep.mubr.msk.bf16.mxu0 %vm613_vm0, %v612_v0  ;;  %v453_v23 = vpop.f32.mrf.mxu0  ;;  %473 = vmatpush3.bf16.msra.mxu0 %v492_v24 }
  0xff   :  { %474 = vmatprep.subr.bf16.mxu0 %v612_v0 }
 0x102   :  { %475 = vmatpush3.bf16.msra.mxu0 %v493_v25 }
 0x1bd   :  { %v261_v26 = vpop.f32.mrf.mxu0  ;;  %v310_v27 = vpop.f32.mrf.mxu1 }
 0x1be   :  { %v311_v29 = vadd.f32 %v310_v27, %v261_v26 }
 0x1bf   :  { %v464_v30 = vpop.f32.mrf.mxu0  ;;  %v470_v31 = vpop.f32.mrf.mxu1 }
 0x1c0   :  { %v323_v32 = vadd.f32 %v432_v28, %v311_v29 }
 0x1c1   :  { %v264_v33 = vpop.f32.mrf.mxu0  ;;  %v313_v34 = vpop.f32.mrf.mxu1 }
 0x1c2   :  { %v324_v35 = vpack.c.bf16 %v323_v32, %v323_v32 }
 0x1c3   :  { %v465_v36 = vpop.f32.mrf.mxu0  ;;  %v471_v37 = vpop.f32.mrf.mxu1 }
 0x1c4   :  { %477 = vmatmul.mubr.msk.bf16.vlgmr.msra.gmra.mxu0 %vm348_vm4, %v324_v35 }
 0x284   :  { %v386_v41 = vpop.f32.mrf.mxu0 }
 0x285   :  { %v387_v42 = vadd.f32 %v433_v40, %v386_v41 }
 0x286   :  { %v478_v43 = vpop.f32.mrf.mxu0 }
 0x287   :  { %v395_v44 = vsel %vm394_vm5, %v387_v42, -inf }
 0x288   :  { %396 = vmax.xlane.f32.xlu0 %v395_v44  ;;  %v389_v45 = vpop.f32.mrf.mxu0 }
 0x28a   :  { %v479_v46 = vpop.f32.mrf.mxu0 }
 0x311   :  { %v397_v47 = vpop.xlane.xlu0 %396 }
 0x312   :  { %v398_v48 = vsub.f32 %v395_v44, %v397_v47 }
 0x314   :  { %v399_v49 = vmul.f32 1.442695, %v398_v48 }
 0x316   :  { %494 = vpow2.f32 %v399_v49 }
 0x323   :  { %v495_v50 = vpop.eup %494 }
 0x324   :  { %401 = vadd.xlane.f32.xlu0 %v495_v50 }
 0x3ad   :  { %v402_v51 = vpop.xlane.xlu0 %401 }
 0x3ae   :  { %496 = vrcp.f32 %v402_v51 }
 0x3bb   :  { %v497_v52 = vpop.eup %496 }
 0x3bc   :  { %v404_v53 = vmul.f32 %v497_v52, %v495_v50 }
 0x3be   :  { %405 = vst [vmem:[#allocation10] sm:$0xff] %v404_v53 }
 0x3bf   :  { %589 = shalt.err (!%p586_p10)
}
 0x3c0   :  { %415 = dma.vmem_to_hbm [thread:$0]  %s413_s28, 128, %s733_s11, [#allocation4]  }
 0x3c1   :  { %604 = dma.done.wait [#allocation4], 128  }
 0x3c2   :  { %605 = vsyncadd [#allocation4], 4294967168 }
 0x3c3   :  { %419 = vsyncpa [#allocation3], 1 }
 0x3c4   :  { %420 = vsyncpa [#allocation6], 1 }
 0x3c5   :  { %421 = vsyncpa [#allocation9], 1 }
 0x3c6   :  { %422 = vsyncpa [#allocation4], 1 }

</bundles_post_ra>
